<compile_context>
chip_gen: v7x
topology: tpu7x:2x2x1
jax: 0.10.0
libtpu: 0.0.40
codegen_flags: <defaults>
</compile_context>

<pallas_src>
import functools

import jax
import jax.numpy as jnp
from jax.experimental import pallas as pl
from jax.experimental.pallas import tpu as pltpu


_ACTIVATIONS = {
    "Tanh": jnp.tanh,
    "ReLU": lambda v: jnp.maximum(v, 0.0),
    "Sigmoid": jax.nn.sigmoid,
    "Identity": lambda v: v,
}


def _rnn_chunk_kernel(x_ref, h0_ref, nb_ref, wx_ref, wh_ref, out_ref, h_scratch,
                      *, act_fn, hidden_size, steps):
    """Runs `steps` recurrent steps for one (batch-block, time-chunk) grid cell."""
    # (Re)initialize the carried state at the start of each batch block's rollout.
    @pl.when(pl.program_id(1) == 0)
    def _():
        h_scratch[...] = h0_ref[...]

    wx = wx_ref[...]                       # (I, H+O)    VMEM-resident
    wh = wh_ref[...]                       # (H+O, H+O)  VMEM-resident (zero rows on action cols)

    bb, ho = h_scratch.shape
    # Activation lane-mask, hoisted out of the per-step loop (one iota+cmp per chunk).
    col = jax.lax.broadcasted_iota(jnp.int32, (bb, ho), 1)
    hid_mask = col < hidden_size

    def step(t, h):
        # Fused projection: [hidden | action] pre-activation; noise + bias are
        # already folded into nb_ref (one streamed (1, H+O) row per step).
        pre = (jnp.dot(x_ref[t], wx, preferred_element_type=jnp.float32)
               + jnp.dot(h, wh, preferred_element_type=jnp.float32)
               + nb_ref[t])                                   # (bb, H+O)
        res = jnp.where(hid_mask, act_fn(pre), pre)
        out_ref[t] = res                                      # store into the dense slab
        return res                                            # carry full (bb, H+O) state

    h_scratch[...] = jax.lax.fori_loop(
        0, steps, step, h_scratch[...],
        unroll=steps if steps <= 32 else 8)


def _vmem_limit_bytes(tt, bb, input_size, ho):
    f32 = 4
    resident = 2 * (input_size * ho + ho * ho + bb * ho) * f32          # weights + h0
    streamed = 2 * (tt * bb * input_size + tt * ho + tt * bb * ho) * f32  # x / nb / out (dbl-buf)
    scratch = bb * ho * f32
    need = resident + streamed + scratch
    # 4x headroom, floor 8 MiB, cap at the v7x per-core physical VMEM.
    return int(min(max(4 * need, 8 << 20), 64 << 20))


def rnn_rollout(xs, hidden0, noises, w_enc, b_enc, w_act, b_act,
                activationfunc="Tanh", time_block=None, batch_block=None):
    """Run T recurrent steps with a chunked-time Pallas kernel.

    xs      : (T, B, I)   inputs per step
    hidden0 : (B, H)      initial hidden state
    noises  : (T, 1, H)   per-step Gaussian noise (broadcast over the batch)
    w_enc   : (I+H, H), b_enc : (1, H)   (weights stored transposed vs torch (out, in))
    w_act   : (I+H, O), b_act : (1, O)
    Returns (actions (T, B, O), hiddens (T, B, H)).
    """
    T, B, I = xs.shape
    H = w_enc.shape[1]
    O = w_act.shape[1]
    HO = H + O
    act_fn = _ACTIVATIONS[activationfunc]

    # Recurrent steps per grid iteration (whole rollout in one grid step at demo size).
    tt = min(T, 32) if time_block is None else max(1, min(time_block, T))
    # Batch rows per grid iteration ("parallel" axis -> megacore split on v7x).
    bb = B if batch_block is None else batch_block
    if B % bb != 0 or (bb != B and bb % 8 != 0):
        raise ValueError("batch_block must divide B and be a multiple of 8 (or equal B)")

    # --- pack weights once (fused [hidden | action] projection per step) -----------
    w_cat = jnp.concatenate([w_enc, w_act], axis=1)          # (I+H, H+O)
    wx = w_cat[:I]                                           # (I,   H+O)
    wh = w_cat[I:]                                           # (H,   H+O)
    b_cat = jnp.concatenate([b_enc, b_act], axis=1)          # (1,   H+O)

    # Fold noise + bias into a single streamed additive term (exact in real math):
    #   (h + n) @ Wh + b = h @ Wh + (n @ Wh + b)
    noise_bias = (noises[:, 0, :] @ wh + b_cat)[:, None, :]  # (T, 1, H+O)

    # Zero-pad Wh over the action columns so the carried state can stay (B, H+O)
    # and the kernel never lane-slices the hidden part per step.
    wh_full = jnp.concatenate([wh, jnp.zeros((O, HO), wh.dtype)], axis=0)      # (H+O, H+O)
    h0_full = jnp.concatenate([hidden0, jnp.zeros((B, O), hidden0.dtype)], axis=1)

    # Pad the time axis to a multiple of the chunk size; padded steps are discarded.
    nt = pl.cdiv(T, tt)
    T_pad = nt * tt
    if T_pad != T:
        xs = jnp.concatenate([xs, jnp.zeros((T_pad - T, B, I), xs.dtype)], axis=0)
        noise_bias = jnp.concatenate(
            [noise_bias, jnp.zeros((T_pad - T, 1, HO), noise_bias.dtype)], axis=0)
    nb_blocks = B // bb

    kernel = functools.partial(_rnn_chunk_kernel, act_fn=act_fn,
                               hidden_size=H, steps=tt)

    out = pl.pallas_call(
        kernel,
        out_shape=jax.ShapeDtypeStruct((T_pad, B, HO), jnp.float32),
        grid_spec=pltpu.PrefetchScalarGridSpec(
            num_scalar_prefetch=0,
            grid=(nb_blocks, nt),                       # (parallel batch, sequential time)
            in_specs=[
                pl.BlockSpec((tt, bb, I), lambda b, t: (t, b, 0)),    # x chunk (streamed)
                pl.BlockSpec((bb, HO), lambda b, t: (b, 0)),          # h0 (resident / batch blk)
                pl.BlockSpec((tt, 1, HO), lambda b, t: (t, 0, 0)),    # noise+bias chunk
                pl.BlockSpec((I, HO), lambda b, t: (0, 0)),           # Wx (VMEM-resident)
                pl.BlockSpec((HO, HO), lambda b, t: (0, 0)),          # Wh padded (VMEM-resident)
            ],
            out_specs=pl.BlockSpec((tt, bb, HO), lambda b, t: (t, b, 0)),
            scratch_shapes=[pltpu.VMEM((bb, HO), jnp.float32)],       # carried state
        ),
        compiler_params=pltpu.CompilerParams(
            dimension_semantics=("parallel", "arbitrary"),
            vmem_limit_bytes=_vmem_limit_bytes(tt, bb, I, HO),
        ),
    )(xs, h0_full, noise_bias, wx, wh_full)

    out = out[:T]
    hiddens = out[..., :H]
    actions = out[..., H:]
    return actions, hiddens


def rnn_forward(x, hidden, noise, w_enc, b_enc, w_act, b_act,
                activationfunc="Tanh"):
    """Single forward step: matches RNN.forward(input, hidden) -> (action, hidden)."""
    if x.ndim == 1:
        x = x[None]                                        # torch's unsqueeze(0)
    if noise.ndim == 1:
        noise = noise[None]
    actions, hiddens = rnn_rollout(x[None], hidden, noise[None],
                                   w_enc, b_enc, w_act, b_act,
                                   activationfunc, time_block=1)
    return actions[0], hiddens[0]


def init_params(key, input_size, hidden_size, output_size, batch_size=1):
    """Deterministic parameter init (nn.Linear-style uniform; stored transposed)."""
    k1, k2, k3, k4 = jax.random.split(key, 4)
    fan_in = input_size + hidden_size
    bound = 1.0 / jnp.sqrt(fan_in)
    w_enc = jax.random.uniform(k1, (fan_in, hidden_size), jnp.float32, -bound, bound)
    b_enc = jax.random.uniform(k2, (1, hidden_size), jnp.float32, -bound, bound)
    w_act = jax.random.uniform(k3, (fan_in, output_size), jnp.float32, -bound, bound)
    b_act = jax.random.uniform(k4, (1, output_size), jnp.float32, -bound, bound)
    hidden0 = jnp.zeros((batch_size, hidden_size), jnp.float32)   # init_hidden()
    return w_enc, b_enc, w_act, b_act, hidden0


if __name__ == "__main__":
    key = jax.random.PRNGKey(0)
    k_param, k_x, k_noise = jax.random.split(key, 3)

    input_size, hidden_size, output_size = 16, 32, 8
    batch_size, seq_len = 2, 8

    w_enc, b_enc, w_act, b_act, hidden0 = init_params(
        k_param, input_size, hidden_size, output_size, batch_size=batch_size)

    xs = jax.random.normal(k_x, (seq_len, batch_size, input_size), jnp.float32)
    # get_noise(): sqrt(2/1) * 1 * N(0,1) of shape (1, H) per step, shared over batch.
    noises = jnp.sqrt(2.0) * jax.random.normal(
        k_noise, (seq_len, 1, hidden_size), jnp.float32)

    # --- single forward step (matches RNN.forward signature) -----------------------
    action, new_hidden = rnn_forward(
        xs[0], hidden0, noises[0], w_enc, b_enc, w_act, b_act, activationfunc="Tanh")

    # --- scanned rollout: the whole T-step recurrence in one kernel launch ---------
    actions, hiddens = rnn_rollout(
        xs, hidden0, noises, w_enc, b_enc, w_act, b_act, activationfunc="Tanh")
    jax.block_until_ready((action, new_hidden, actions, hiddens))

    # ---- plain-JAX reference ----
    h = hidden0
    ref_actions, ref_hiddens = [], []
    for t in range(seq_len):
        comb = jnp.concatenate([xs[t], h + noises[t]], axis=1)
        h = jnp.tanh(comb @ w_enc + b_enc)
        a = comb @ w_act + b_act
        ref_actions.append(a)
        ref_hiddens.append(h)
    ref_actions = jnp.stack(ref_actions)
    ref_hiddens = jnp.stack(ref_hiddens)

    assert jnp.allclose(action, ref_actions[0], atol=1e-4)
    assert jnp.allclose(new_hidden, ref_hiddens[0], atol=1e-4)
    assert jnp.allclose(actions, ref_actions, atol=1e-4)
    assert jnp.allclose(hiddens, ref_hiddens, atol=1e-4)

    print("KERNEL_OK")
</pallas_src>

<mosaic_0001>
module attributes {stable_mosaic.version = 11 : i64} {
  func.func @_rnn_chunk_kernel(%arg0: i32, %arg1: i32, %arg2: memref<1x2x16xf32, #tpu.memory_space<vmem>>, %arg3: memref<2x40xf32, #tpu.memory_space<vmem>>, %arg4: memref<1x1x40xf32, #tpu.memory_space<vmem>>, %arg5: memref<16x40xf32, #tpu.memory_space<vmem>>, %arg6: memref<40x40xf32, #tpu.memory_space<vmem>>, %arg7: memref<1x2x40xf32, #tpu.memory_space<vmem>>, %arg8: memref<2x40xf32, #tpu.memory_space<vmem>>) attributes {dimension_semantics = [#tpu.dimension_semantics<parallel>, #tpu.dimension_semantics<arbitrary>], iteration_bounds = array<i64: 1, 1>, scalar_prefetch = 0 : i64, scratch_operands = 1 : i64, tpu.core_type = #tpu.core_type<tc>, window_params = [{transform_indices = @transform_0, window_bounds = array<i64: 1, 2, 16>}, {transform_indices = @transform_1, window_bounds = array<i64: 2, 40>}, {transform_indices = @transform_2, window_bounds = array<i64: 1, 1, 40>}, {pipeline_mode = #tpu.pipeline_mode<synchronous>, transform_indices = @transform_3, window_bounds = array<i64: 16, 40>}, {pipeline_mode = #tpu.pipeline_mode<synchronous>, transform_indices = @transform_4, window_bounds = array<i64: 40, 40>}, {transform_indices = @transform_5, window_bounds = array<i64: 1, 2, 40>}]} {
    %c0_i32 = arith.constant 0 : i32
    %0 = arith.cmpi eq, %arg1, %c0_i32 : i32
    %1 = arith.extui %0 : i1 to i32
    %c0_i32_0 = arith.constant 0 : i32
    %2 = arith.cmpi ne, %1, %c0_i32_0 : i32
    scf.if %2 {
      %c0_16 = arith.constant 0 : index
      %c0_17 = arith.constant 0 : index
      %27 = vector.load %arg3[%c0_16, %c0_17] : memref<2x40xf32, #tpu.memory_space<vmem>>, vector<2x40xf32>
      %c0_18 = arith.constant 0 : index
      %c0_19 = arith.constant 0 : index
      %28 = vector.load %arg8[%c0_18, %c0_19] : memref<2x40xf32, #tpu.memory_space<vmem>>, vector<2x40xf32>
      tpu.vector_store %arg8[%c0_18, %c0_19], %27 {strides = array<i32>} : memref<2x40xf32, #tpu.memory_space<vmem>>, vector<2x40xf32>,
    } else {
    }
    %c0 = arith.constant 0 : index
    %c0_1 = arith.constant 0 : index
    %3 = vector.load %arg5[%c0, %c0_1] : memref<16x40xf32, #tpu.memory_space<vmem>>, vector<16x40xf32>
    %c0_2 = arith.constant 0 : index
    %c0_3 = arith.constant 0 : index
    %4 = vector.load %arg6[%c0_2, %c0_3] : memref<40x40xf32, #tpu.memory_space<vmem>>, vector<40x40xf32>
    %5 = tpu.iota {dimensions = array<i32: 1>} : vector<2x40xi32>
    %c32_i32 = arith.constant 32 : i32
    %6 = vector.broadcast %c32_i32 : i32 to vector<2x40xi32>
    %7 = arith.cmpi slt, %5, %6 : vector<2x40xi32>
    %c0_4 = arith.constant 0 : index
    %c0_5 = arith.constant 0 : index
    %8 = vector.load %arg8[%c0_4, %c0_5] : memref<2x40xf32, #tpu.memory_space<vmem>>, vector<2x40xf32>
    %c0_i32_6 = arith.constant 0 : i32
    %9 = arith.index_cast %c0_i32_6 : i32 to index
    %c0_7 = arith.constant 0 : index
    %c0_8 = arith.constant 0 : index
    %10 = vector.load %arg2[%9, %c0_7, %c0_8] : memref<1x2x16xf32, #tpu.memory_space<vmem>>, vector<1x2x16xf32>
    %11 = vector.shape_cast %10 : vector<1x2x16xf32> to vector<2x16xf32>
    %cst = arith.constant dense<0.000000e+00> : vector<2x40xf32>
    %12 = tpu.matmul %11, %3, %cst {dimension_numbers = #tpu.dot_dimension_numbers<[1], [0], [0], [1], [0, 0, 1, 1], [], []>} : vector<2x16xf32>, vector<16x40xf32>, vector<2x40xf32> -> vector<2x40xf32>
    %cst_9 = arith.constant dense<0.000000e+00> : vector<2x40xf32>
    %13 = tpu.matmul %8, %4, %cst_9 {dimension_numbers = #tpu.dot_dimension_numbers<[1], [0], [0], [1], [0, 0, 1, 1], [], []>} : vector<2x40xf32>, vector<40x40xf32>, vector<2x40xf32> -> vector<2x40xf32>
    %14 = arith.addf %12, %13 : vector<2x40xf32>
    %15 = arith.index_cast %c0_i32_6 : i32 to index
    %c0_10 = arith.constant 0 : index
    %c0_11 = arith.constant 0 : index
    %16 = vector.load %arg4[%15, %c0_10, %c0_11] : memref<1x1x40xf32, #tpu.memory_space<vmem>>, vector<1x1x40xf32>
    %17 = vector.shape_cast %16 : vector<1x1x40xf32> to vector<1x40xf32>
    %18 = vector.broadcast %17 : vector<1x40xf32> to vector<2x40xf32>
    %19 = arith.addf %14, %18 : vector<2x40xf32>
    %20 = math.tanh %19 : vector<2x40xf32>
    %21 = arith.select %7, %20, %19 : vector<2x40xi1>, vector<2x40xf32>
    %22 = arith.index_cast %c0_i32_6 : i32 to index
    %c0_12 = arith.constant 0 : index
    %c0_13 = arith.constant 0 : index
    %23 = vector.load %arg7[%22, %c0_12, %c0_13] : memref<1x2x40xf32, #tpu.memory_space<vmem>>, vector<1x2x40xf32>
    %24 = vector.shape_cast %23 : vector<1x2x40xf32> to vector<2x40xf32>
    %25 = vector.shape_cast %21 : vector<2x40xf32> to vector<1x2x40xf32>
    tpu.vector_store %arg7[%22, %c0_12, %c0_13], %25 {strides = array<i32>} : memref<1x2x40xf32, #tpu.memory_space<vmem>>, vector<1x2x40xf32>,
    %c1_i32 = arith.constant 1 : i32
    %c0_14 = arith.constant 0 : index
    %c0_15 = arith.constant 0 : index
    %26 = vector.load %arg8[%c0_14, %c0_15] : memref<2x40xf32, #tpu.memory_space<vmem>>, vector<2x40xf32>
    tpu.vector_store %arg8[%c0_14, %c0_15], %21 {strides = array<i32>} : memref<2x40xf32, #tpu.memory_space<vmem>>, vector<2x40xf32>,
    return
  }
  func.func @transform_0(%arg0: i32, %arg1: i32) -> (i32, i32, i32) {
    %c0_i32 = arith.constant 0 : i32
    %c0_i32_0 = arith.constant 0 : i32
    return %arg1, %arg0, %c0_i32 : i32, i32, i32
  }
  func.func @transform_1(%arg0: i32, %arg1: i32) -> (i32, i32) {
    %c0_i32 = arith.constant 0 : i32
    %c0_i32_0 = arith.constant 0 : i32
    return %arg0, %c0_i32 : i32, i32
  }
  func.func @transform_2(%arg0: i32, %arg1: i32) -> (i32, i32, i32) {
    %c0_i32 = arith.constant 0 : i32
    %c0_i32_0 = arith.constant 0 : i32
    %c0_i32_1 = arith.constant 0 : i32
    return %arg1, %c0_i32, %c0_i32_0 : i32, i32, i32
  }
  func.func @transform_3(%arg0: i32, %arg1: i32) -> (i32, i32) {
    %c0_i32 = arith.constant 0 : i32
    %c0_i32_0 = arith.constant 0 : i32
    %c0_i32_1 = arith.constant 0 : i32
    return %c0_i32, %c0_i32_0 : i32, i32
  }
  func.func @transform_4(%arg0: i32, %arg1: i32) -> (i32, i32) {
    %c0_i32 = arith.constant 0 : i32
    %c0_i32_0 = arith.constant 0 : i32
    %c0_i32_1 = arith.constant 0 : i32
    return %c0_i32, %c0_i32_0 : i32, i32
  }
  func.func @transform_5(%arg0: i32, %arg1: i32) -> (i32, i32, i32) {
    %c0_i32 = arith.constant 0 : i32
    %c0_i32_0 = arith.constant 0 : i32
    return %arg1, %arg0, %c0_i32 : i32, i32, i32
  }
}

</mosaic_0001>

<bundles_post_ra>
// kernel: tpu_custom_call.1
= control target key start
LH: loop header
LB: loop body
LE: loop exit
PB: predicated region body
PF: predicated region fallthrough
CT: control target
= control target key end

     0   :  { %10 = vsyncpa [#allocation4], 0  ;;  %s504_s0 = inlined_call_operand.hbm [shape: f32[1,2,16], index: 0, kind: input, shape index: {}]   ;;  %s505_s1 = inlined_call_operand.vmem [shape: f32[2,40], index: 1, kind: input, shape index: {}]   ;;  %s506_s2 = inlined_call_operand.vmem [shape: f32[1,1,40], index: 2, kind: input, shape index: {}]   ;;  %s507_s3 = inlined_call_operand.hbm [shape: f32[16,40], index: 3, kind: input, shape index: {}]   ;;  %s508_s4 = inlined_call_operand.hbm [shape: f32[40,40], index: 4, kind: input, shape index: {}]   ;;  %s509_s5 = inlined_call_operand.hbm [shape: f32[1,2,40], index: 5, kind: output, shape index: {}]  }
   0x1   :  { %11 = vsyncpa [#allocation7], 0 }
   0x2   :  { %12 = vsyncpa [#allocation5], 0  ;;  %s402_s18 = smov [#allocation6]   ;;  %s308_s22 = scalar_lea.hbm %s507_s3, 256 }
   0x3   :  { %s32_s19 = sshll.u32 %s402_s18, 4  ;;  %p309_p0 = scmp.ne.s32.totalorder %s507_s3, %s308_s22  ;;  %s33_s19 = int_to_ptr.vmem [resolvable:$true] %s32_s19 }
   0x4   :  { %p312_p1 = scmp.lt.u32.totalorder %s308_s22, %s507_s3 }
   0x6   :  { %p314_p2 = pnand %p312_p1, %p309_p0 }
   0x8   :  { %317 = shalt.err (!%p314_p2)
}
   0x9   :  { %s318_s27 = scalar_lea.vmem %s33_s19, 256  ;;  %p323_p4 = scmp.lt.s32.totalorder %s33_s19, %s33_s19 }
   0xa   :  { %p319_p3 = scmp.ne.s32.totalorder %s33_s19, %s318_s27  ;;  %p324_p5 = scmp.lt.s32.totalorder %s318_s27, %s318_s27 }
   0xc   :  { %p325_p6 = por %p324_p5, %p323_p4 }
   0xe   :  { %p326_p7 = pnand %p325_p6, %p319_p3 }
  0x10   :  { %329 = shalt.err (!%p326_p7)
}
  0x11   :  { %s403_s28 = smov 128   ;;  %s404_s29 = smov 8  }
  0x12   :  { %38 = dma.hbm_to_vmem [thread:$0]  %s507_s3, 256, %s33_s19, [#allocation7], %s403_s28, %s403_s28, %s404_s29  }
  0x13   :  { %s405_s7 = smov [#allocation3]   ;;  %s406_s9 = smov [#allocation8]  }
  0x14   :  { %s19_s8 = sshll.u32 %s405_s7, 4  ;;  %s44_s10 = sshll.u32 %s406_s9, 4  ;;  %s20_s8 = int_to_ptr.vmem [resolvable:$true] %s19_s8  ;;  %s45_s10 = int_to_ptr.vmem [resolvable:$true] %s44_s10 }
  0x15   :  { %s330_s13 = scalar_lea.hbm %s504_s0, 32 }
  0x16   :  { %p331_p8 = scmp.ne.s32.totalorder %s504_s0, %s330_s13  ;;  %p334_p9 = scmp.lt.u32.totalorder %s330_s13, %s504_s0 }
  0x18   :  { %p336_p10 = pnand %p334_p9, %p331_p8 }
  0x1a   :  { %339 = shalt.err (!%p336_p10)
}
  0x1b   :  { %s340_s3 = scalar_lea.vmem %s20_s8, 32  ;;  %p345_p12 = scmp.lt.s32.totalorder %s20_s8, %s20_s8 }
  0x1c   :  { %p341_p11 = scmp.ne.s32.totalorder %s20_s8, %s340_s3  ;;  %p346_p13 = scmp.lt.s32.totalorder %s340_s3, %s340_s3 }
  0x1e   :  { %p347_p0 = por %p346_p13, %p345_p12 }
  0x20   :  { %p348_p1 = pnand %p347_p0, %p341_p11 }
  0x22   :  { %351 = shalt.err (!%p348_p1)
}
  0x23   :  { %22 = dma.hbm_to_vmem [thread:$0]  %s504_s0, 32, %s20_s8, [#allocation4]  }
  0x24   :  { %s352_s22 = scalar_lea.hbm %s508_s4, 640 }
  0x25   :  { %p353_p2 = scmp.ne.s32.totalorder %s508_s4, %s352_s22  ;;  %p356_p3 = scmp.lt.u32.totalorder %s352_s22, %s508_s4 }
  0x27   :  { %p358_p4 = pnand %p356_p3, %p353_p2 }
  0x29   :  { %361 = shalt.err (!%p358_p4)
}
  0x2a   :  { %s362_s27 = scalar_lea.vmem %s45_s10, 640  ;;  %p367_p6 = scmp.lt.s32.totalorder %s45_s10, %s45_s10 }
  0x2b   :  { %p363_p5 = scmp.ne.s32.totalorder %s45_s10, %s362_s27  ;;  %p368_p7 = scmp.lt.s32.totalorder %s362_s27, %s362_s27 }
  0x2d   :  { %p369_p8 = por %p368_p7, %p367_p6 }
  0x2f   :  { %p370_p9 = pnand %p369_p8, %p363_p5 }
  0x31   :  { %373 = shalt.err (!%p370_p9)
}
  0x32   :  { %50 = dma.hbm_to_vmem [thread:$0]  %s508_s4, 640, %s45_s10, [#allocation7], %s403_s28, %s403_s28, %s404_s29  }
  0x33   :  { %396 = dma.done.wait [#allocation4], 32  }
  0x34   :  { %397 = vsyncadd [#allocation4], 4294967264 }
  0x35   :  { %398 = dma.done.wait [#allocation7], 896  }
  0x36   :  { %399 = vsyncadd [#allocation7], 4294966400  ;;  %v407_v0 = vmov 0.0|0.0   ;;  %vm408_vm0 = vmmov 0   ;;  %v409_v1 = vmov 0.0   ;;  %v69_v2 = vld [vmem:[#allocation8] sm:$0xff]  ;;  %v74_v22 = vlaneseq }
  0x37   :  { %288 = vmatprep.subr.bf16.mxu0 %v407_v0  ;;  %294 = vmatprep.subr.bf16.mxu1 %v407_v0  ;;  %v70_v3 = vld [vmem:[#allocation8 + $0x8] sm:$0xff]  ;;  %v71_v4 = vld [vmem:[#allocation8 + $0x10] sm:$0xff]  ;;  %vm65_vm1 = vcmask 320512   ;;  %v72_v6 = vld [vmem:[#allocation8 + $0x18] sm:$0xff]  ;;  %vm153_vm2 = vcmask 130048   ;;  %vm79_vm3 = vcmask 326656  }
  0x38   :  { %285 = vmatprep.mubr.msk.f32.mxu1 %vm408_vm0, %v409_v1  ;;  %278 = vmatprep.mubr.msk.f32.mxu0 %vm408_vm0, %v409_v1  ;;  %v289_v5 = vpack.c.bf16 %v70_v3, %v69_v2  ;;  %v67_v7 = vld [vmem:[#allocation6] sm:$0xff]  ;;  %v68_v8 = vld [vmem:[#allocation6 + $0x8] sm:$0xff]  ;;  %v64_v10 = vld [vmem:[%s505_s1] sm:$0x3]  ;;  %v292_v11 = vpack.c.bf16 %v72_v6, %v71_v4  ;;  %v75_v23 = vand.u32 127, %v74_v22  ;;  %s410_s6 = smov [#allocation9]  }
  0x39   :  { %v295_v9 = vpack.c.bf16 %v68_v8, %v67_v7  ;;  %66 = vst.msk [vmem:[#allocation2] sm:$0x3] %vm65_vm1, %v64_v10  ;;  %v78_v12 = vld [vmem:[#allocation3] sm:$0x3]  ;;  %v73_v13 = vld [vmem:[#allocation8 + $0x20] sm:$0xff]  ;;  %s246_s7 = sshll.u32 %s410_s6, 4  ;;  %s247_s7 = int_to_ptr.vmem [resolvable:$true] %s246_s7 }
  0x3a   :  { %290 = vmatpush3.bf16.msra.mxu0 %v289_v5  ;;  %v258_v18 = vld [vmem:[%s506_s2] ss:$0 sm:$0xff]  ;;  %vm76_vm4 = vcmp.lt.s32.totalorder %v75_v23, 32  ;;  %s374_s8 = scalar_lea.vmem %s247_s7, 32  ;;  %p379_p11 = scmp.lt.s32.totalorder %s247_s7, %s247_s7 }
  0x3b   :  { %291 = vmatprep.subr.bf16.mxu0 %v407_v0  ;;  %296 = vmatpush3.bf16.msra.mxu1 %v295_v9  ;;  %p375_p10 = scmp.ne.s32.totalorder %s247_s7, %s374_s8  ;;  %p380_p12 = scmp.lt.s32.totalorder %s374_s8, %s374_s8 }
  0x3d   :  { %p381_p13 = por %p380_p12, %p379_p11 }
  0x3e   :  { %293 = vmatpush3.bf16.msra.mxu0 %v292_v11  ;;  %286 = vmatmul.mubr.msk.f32.vlgmr.msra.gmra.mrb[0].mxu1 %vm153_vm2, %v78_v12 }
  0x3f   :  { %276 = vmatprep.subr.mxu0 %v409_v1  ;;  %p382_p0 = pnand %p381_p13, %p375_p10 }
  0x40   :  { %v77_v14 = vld [vmem:[#allocation2] sm:$0x3] }
  0x42   :  { %277 = vmatpush3.msra.mxu0 %v73_v13 }
  0x43   :  { %279 = vmatmul.mubr.msk.f32.vlgmr.msra.gmra.mrb[0].mxu0 %vm79_vm3, %v77_v14 }
 0x111   :  { %v223_v15 = vpop.f32.mrb[0].mxu1 }
 0x112   :  { %v287_v16 = vpop.f32.mrb[1].mxu1 }
 0x116   :  { %v149_v17 = vpop.f32.mrb[0].mxu0 }
 0x117   :  { %v224_v19 = vadd.f32 %v223_v15, %v149_v17  ;;  %v280_v20 = vpop.f32.mrb[1].mxu0 }
 0x119   :  { %v234_v21 = vadd.f32 %v258_v18, %v224_v19 }
 0x11b   :  { %306 = vtanh.f32 %v234_v21 }
 0x125   :  { %v307_v24 = vpop.eup %306 }
 0x126   :  { %v236_v25 = vsel %vm76_vm4, %v307_v24, %v234_v21 }
 0x127   :  { %238 = vst.msk [vmem:[#allocation9] sm:$0x3] %vm65_vm1, %v236_v25  ;;  %239 = vst.msk [vmem:[#allocation2] sm:$0x3] %vm65_vm1, %v236_v25 }
 0x128   :  { %385 = shalt.err (!%p382_p0)
}
 0x129   :  { %s386_s10 = scalar_lea.hbm %s509_s5, 32 }
 0x12a   :  { %p387_p1 = scmp.ne.s32.totalorder %s509_s5, %s386_s10  ;;  %p390_p2 = scmp.lt.u32.totalorder %s386_s10, %s509_s5 }
 0x12c   :  { %p392_p3 = pnand %p390_p2, %p387_p1 }
 0x12e   :  { %395 = shalt.err (!%p392_p3)
}
 0x12f   :  { %249 = dma.vmem_to_hbm [thread:$0]  %s247_s7, 32, %s509_s5, [#allocation5]  }
 0x130   :  { %400 = dma.done.wait [#allocation5], 32  }
 0x131   :  { %401 = vsyncadd [#allocation5], 4294967264 }
 0x132   :  { %253 = vsyncpa [#allocation4], 1 }
 0x133   :  { %254 = vsyncpa [#allocation7], 1 }
 0x134   :  { %255 = vsyncpa [#allocation5], 1 }

</bundles_post_ra>
